<compile_context>
chip_gen: v6e
topology: v6e:2x2x1
jax: 0.10.0
libtpu: 0.0.40
codegen_flags: <defaults>
</compile_context>

<pallas_src>
import functools

import jax
import jax.numpy as jnp
import numpy as np
from jax.experimental import pallas as pl
from jax.experimental.pallas import tpu as pltpu


# ---------------------------------------------------------------------------
# Fused forward kernel: one grid step per group of B_inner batch elements.
# Activations are channel-major (C, L) with L = B_inner * H * W on the lane
# axis.
# ---------------------------------------------------------------------------
def _fused_forward_kernel(masks_ref, x_ref, coef_ref,
                          w123_ref, b123_ref, w4_ref, b4_ref,
                          s_ref, *, W, L):
  masks = masks_ref[...]                      # (9, 1, L) tap-validity masks

  def im2col(act):
    # act: (Cin, L) -> (9*Cin, L); rows tap-major (tap t = (dh+1)*3 + (dw+1)).
    taps = []
    t = 0
    for dh in (-1, 0, 1):
      for dw in (-1, 0, 1):
        off = dh * W + dw
        if off == 0:
          taps.append(act)                    # center tap: mask ≡ 1, skip mul
        else:
          # shifted[:, p] == act[:, (p + off) % L]; wrapped lanes are exactly
          # the spatially-invalid (or cross-image) taps -> zeroed by the mask.
          taps.append(pltpu.roll(act, (-off) % L, axis=1) * masks[t])
        t += 1
    return jnp.concatenate(taps, axis=0)

  def conv_mm(w_ref, patches, b_ref):
    # bf16 MXU matmul with f32 accumulation; bias (Cout, 1) broadcasts lanes.
    y = jnp.dot(w_ref[...], patches.astype(jnp.bfloat16),
                preferred_element_type=jnp.float32)
    return y + b_ref[...]

  x = x_ref[0]                                           # (8, L) padded input
  y123 = conv_mm(w123_ref, im2col(x), b123_ref)          # conv1|2|3  (24, L)
  a123 = jnp.maximum(y123, 0.0)                          # [relu1|relu2|relu3]
  a3s = jax.nn.sigmoid(y123[16:24])                      # sigmoid(conv3)

  # conv4 (+ folded logits.mean()) -> relu
  a4 = jnp.maximum(conv_mm(w4_ref, im2col(a123[0:8]), b4_ref), 0.0)  # (16, L)

  # conv5..conv8 only feed global means: exact linear fold onto coefficient
  # maps.  Per-step scalar = 2*sum(conv5) + sum(conv6) + sum(conv7)
  # + sum(conv8) minus bias constants (added back in the wrapper).
  coef = coef_ref[...]                                   # (48, L)
  s = (jnp.sum(a123 * coef[0:24])
       + jnp.sum(a3s * coef[24:32])
       + jnp.sum(a4 * coef[32:48]))
  s_ref[...] = s.reshape(1, 1, 1)


# ---------------------------------------------------------------------------
# Glue helpers (layout / math prep; tiny and traced once under jit).
# ---------------------------------------------------------------------------
def _tap_masks(H, W):
  """(9, 1, H*W) f32 masks: 1 where tap (dh, dw) is spatially valid."""
  hh, ww = np.divmod(np.arange(H * W), W)
  rows = []
  for dh in (-1, 0, 1):
    for dw in (-1, 0, 1):
      valid = ((hh + dh >= 0) & (hh + dh < H) & (ww + dw >= 0) & (ww + dw < W))
      rows.append(valid.astype(np.float32))
  return jnp.asarray(np.stack(rows)[:, None, :])


def _w2mat(w_hwio):
  """(3,3,Cin,Cout) HWIO -> (Cout, 9*Cin), tap-major columns (t*Cin + cin)."""
  cout = w_hwio.shape[-1]
  return jnp.transpose(w_hwio, (3, 0, 1, 2)).reshape(cout, -1)


def _coef_map(w_hwio, H, W):
  """(Cin, H*W): coefficient of each input pixel in sum_{co,oh,ow} conv_same.

  Exact identity: sum over all output channels / positions of a 'same' 3x3
  conv is linear in the input, so it equals <input, G> with G below.
  """
  wsum = jnp.sum(w_hwio, axis=3)                  # (3, 3, Cin)
  hh, ww = np.divmod(np.arange(H * W), W)
  cmap = jnp.zeros((w_hwio.shape[2], H * W), jnp.float32)
  for kh in range(3):
    for kw in range(3):
      dh, dw = kh - 1, kw - 1
      # input pixel (h,w) reaches output (h-dh, w-dw) through tap (kh,kw)
      valid = ((hh - dh >= 0) & (hh - dh < H) &
               (ww - dw >= 0) & (ww - dw < W)).astype(np.float32)
      cmap = cmap + wsum[kh, kw][:, None] * jnp.asarray(valid)[None, :]
  return cmap


# ---------------------------------------------------------------------------
# Forward pass.
# ---------------------------------------------------------------------------
@jax.jit
def sample_net1_forward(params, x_nchw):
  N, cin, H, W = x_nchw.shape
  HW = H * W
  lm = jnp.mean(params["logits"])

  # Batch-into-lanes fold; keep >= 2 grid steps so both v7x TCs get work.
  bps = 1
  for cand in range(N // 2, 0, -1):
    if N % cand == 0 and cand * HW <= 4096:
      bps = cand
      break
  G = N // bps
  L = bps * HW

  # Channel-major input, Cin padded to 8, bps images folded onto lanes.
  x_cm = x_nchw.astype(jnp.float32).reshape(N, cin, HW)
  x_cm = jnp.pad(x_cm, ((0, 0), (0, 8 - cin), (0, 0)))
  x_cm = x_cm.reshape(G, bps, 8, HW).transpose(0, 2, 1, 3).reshape(G, 8, L)

  # conv1 | conv2 | conv3 fused (shared input), Cin padded to 8, bf16 weights.
  w1, b1 = params["conv1"]; w2, b2 = params["conv2"]; w3, b3 = params["conv3"]
  w123 = jnp.pad(jnp.concatenate([w1, w2, w3], axis=3),
                 ((0, 0), (0, 0), (0, 8 - cin), (0, 0)))          # (3,3,8,24)
  w123_m = _w2mat(w123).astype(jnp.bfloat16)                      # (24, 72)
  b123_m = jnp.concatenate([b1, b2, b3]).reshape(-1, 1)

  w4, b4 = params["conv4"]
  w4_m = _w2mat(w4).astype(jnp.bfloat16)                          # (16, 72)
  b4_m = (b4 + lm).reshape(-1, 1)               # fold logits.mean() (exact)

  # conv5..conv8 feed only global means -> per-pixel coefficient maps.
  w5, b5 = params["conv5"]; w6, b6 = params["conv6"]
  w7, b7 = params["conv7"]; w8, b8 = params["conv8"]
  G5  = _coef_map(w5, H, W)                     # weights a4
  G6a = _coef_map(w6[:, :, 0:8, :], H, W)       # a2   (cat1 = [a2|a3r|a3s])
  G6b = _coef_map(w6[:, :, 8:16, :], H, W)      # a3r
  G6c = _coef_map(w6[:, :, 16:24, :], H, W)     # a3s
  G7  = _coef_map(w7, H, W)                     # a3s
  G8a = _coef_map(w8[:, :, 0:8, :], H, W)       # a1   (cat2 = [a1|a2])
  G8b = _coef_map(w8[:, :, 8:16, :], H, W)      # a2
  # numerator = 2*sum(conv5) + sum(conv6) + sum(conv7) + sum(conv8)
  coef = jnp.concatenate([G8a,            # a1   rows  0:8
                          G6a + G8b,      # a2   rows  8:16
                          G6b,            # a3r  rows 16:24
                          G6c + G7,       # a3s  rows 24:32
                          2.0 * G5],      # a4   rows 32:48
                         axis=0)
  coef = jnp.tile(coef, (1, bps))                                  # (48, L)
  bias_const = HW * (2.0 * jnp.sum(b5) + jnp.sum(b6)
                     + jnp.sum(b7) + jnp.sum(b8))

  masks = jnp.tile(_tap_masks(H, W), (1, 1, bps))                  # (9, 1, L)

  fullspec = lambda a: pl.BlockSpec(a.shape, lambda n, _nd=a.ndim: (0,) * _nd)
  kernel = functools.partial(_fused_forward_kernel, W=W, L=L)
  s = pl.pallas_call(
      kernel,
      out_shape=jax.ShapeDtypeStruct((G, 1, 1), jnp.float32),
      grid=(G,),
      in_specs=[
          fullspec(masks),                                   # boundary masks
          pl.BlockSpec((1, 8, L), lambda n: (n, 0, 0)),      # x channel-major
          fullspec(coef),                                    # coefficient maps
          fullspec(w123_m), fullspec(b123_m),
          fullspec(w4_m), fullspec(b4_m),
      ],
      out_specs=pl.BlockSpec((1, 1, 1), lambda n: (n, 0, 0)),
      compiler_params=pltpu.CompilerParams(
          dimension_semantics=("parallel",)),                # 2 TCs on v7x
  )(masks, x_cm, coef, w123_m, b123_m, w4_m, b4_m)

  # x_sum1 / conv5 / conv6 / conv7 are all (N, 32, H, W).
  denom = jnp.float32(N * 32 * HW)
  return (jnp.sum(s) + N * bias_const) / denom + lm


# ---------------------------------------------------------------------------
# Parameters (HWIO weights, PyTorch-style init) and pure-JAX reference.
# ---------------------------------------------------------------------------
_CONV_DEFS = {
    "conv1": (3, 8), "conv2": (3, 8), "conv3": (3, 8), "conv4": (8, 16),
    "conv5": (16, 32), "conv6": (24, 32), "conv7": (8, 32), "conv8": (16, 32),
}


def init_params(key):
  params = {}
  for name, (cin, cout) in _CONV_DEFS.items():
    key, kw_, kb_ = jax.random.split(key, 3)
    bound = 1.0 / np.sqrt(cin * 9)               # fan_in bound
    w = jax.random.uniform(kw_, (3, 3, cin, cout), jnp.float32, -bound, bound)
    b = jax.random.uniform(kb_, (cout,), jnp.float32, -bound, bound)
    params[name] = (w, b)
  params["logits"] = jnp.ones((1, 10, 1, 1), jnp.float32)   # constant 1.0 init
  return params


def _conv_ref(params, name, inp):
  w, b = params[name]
  y = jax.lax.conv_general_dilated(
      inp, w, (1, 1), "SAME", dimension_numbers=("NHWC", "HWIO", "NHWC"))
  return y + b.reshape(1, 1, 1, -1)


def reference_forward(params, x_nchw):
  x = jnp.transpose(x_nchw, (0, 2, 3, 1)).astype(jnp.float32)
  lm = jnp.mean(params["logits"])
  xc1 = _conv_ref(params, "conv1", x)
  xc2 = _conv_ref(params, "conv2", x)
  xc3 = _conv_ref(params, "conv3", x)
  a1 = jax.nn.relu(xc1)
  xc4 = _conv_ref(params, "conv4", a1) + lm
  a4 = jax.nn.relu(xc4)
  xc5 = _conv_ref(params, "conv5", a4)
  a2 = jax.nn.relu(xc2)
  a3r = jax.nn.relu(xc3)
  a3s = jax.nn.sigmoid(xc3)
  xc7 = _conv_ref(params, "conv7", a3s)
  xc6 = _conv_ref(params, "conv6", jnp.concatenate([a2, a3r, a3s], axis=-1))
  xc8 = _conv_ref(params, "conv8", jnp.concatenate([a1, a2], axis=-1))
  xs1 = xc5 + xc8
  return (jnp.mean(xs1) + jnp.mean(xc5) + jnp.mean(xc6) + jnp.mean(xc7) + lm)


# ---------------------------------------------------------------------------
if __name__ == "__main__":
  key = jax.random.PRNGKey(0)
  pkey, xkey = jax.random.split(key)
  params = init_params(pkey)

  # NCHW input, in_channels=3 as required by the module.
  x = jax.random.normal(xkey, (2, 3, 16, 16), jnp.float32)

  out = jax.block_until_ready(sample_net1_forward(params, x))
  ref = jax.block_until_ready(reference_forward(params, x))
  assert np.allclose(np.asarray(out), np.asarray(ref), rtol=1e-2, atol=1e-2), (
      float(out), float(ref))
  print("KERNEL_OK")
</pallas_src>

<mosaic_0001>
module attributes {stable_mosaic.version = 11 : i64} {
  func.func @_fused_forward_kernel(%arg0: i32, %arg1: memref<9x1x256xf32, #tpu.memory_space<vmem>>, %arg2: memref<1x8x256xf32, #tpu.memory_space<vmem>>, %arg3: memref<48x256xf32, #tpu.memory_space<vmem>>, %arg4: memref<24x72xbf16, #tpu.memory_space<vmem>>, %arg5: memref<24x1xf32, #tpu.memory_space<vmem>>, %arg6: memref<16x72xbf16, #tpu.memory_space<vmem>>, %arg7: memref<16x1xf32, #tpu.memory_space<vmem>>, %arg8: memref<1x1x1xf32, #tpu.memory_space<vmem>>) attributes {dimension_semantics = [#tpu.dimension_semantics<parallel>], iteration_bounds = array<i64: 2>, scalar_prefetch = 0 : i64, scratch_operands = 0 : i64, tpu.core_type = #tpu.core_type<tc>, window_params = [{pipeline_mode = #tpu.pipeline_mode<synchronous>, transform_indices = @transform_0, window_bounds = array<i64: 9, 1, 256>}, {transform_indices = @transform_1, window_bounds = array<i64: 1, 8, 256>}, {pipeline_mode = #tpu.pipeline_mode<synchronous>, transform_indices = @transform_2, window_bounds = array<i64: 48, 256>}, {pipeline_mode = #tpu.pipeline_mode<synchronous>, transform_indices = @transform_3, window_bounds = array<i64: 24, 72>}, {pipeline_mode = #tpu.pipeline_mode<synchronous>, transform_indices = @transform_4, window_bounds = array<i64: 24, 1>}, {pipeline_mode = #tpu.pipeline_mode<synchronous>, transform_indices = @transform_5, window_bounds = array<i64: 16, 72>}, {pipeline_mode = #tpu.pipeline_mode<synchronous>, transform_indices = @transform_6, window_bounds = array<i64: 16, 1>}, {transform_indices = @transform_7, window_bounds = array<i64: 1, 1, 1>}]} {
    %c0 = arith.constant 0 : index
    %c0_0 = arith.constant 0 : index
    %c0_1 = arith.constant 0 : index
    %0 = vector.load %arg1[%c0, %c0_0, %c0_1] : memref<9x1x256xf32, #tpu.memory_space<vmem>>, vector<9x1x256xf32>
    %c0_2 = arith.constant 0 : index
    %c0_3 = arith.constant 0 : index
    %c0_4 = arith.constant 0 : index
    %1 = vector.load %arg2[%c0_2, %c0_3, %c0_4] : memref<1x8x256xf32, #tpu.memory_space<vmem>>, vector<1x8x256xf32>
    %2 = vector.shape_cast %1 : vector<1x8x256xf32> to vector<8x256xf32>
    %c17_i32 = arith.constant 17 : i32
    %3 = tpu.dynamic_rotate %2 by %c17_i32 dim 1 : vector<8x256xf32>, i32 -> vector<8x256xf32>
    %4 = vector.extract_strided_slice %0 {offsets = [0, 0, 0], sizes = [1, 1, 256], strides = [1, 1, 1]} : vector<9x1x256xf32> to vector<1x1x256xf32>
    %5 = vector.shape_cast %4 : vector<1x1x256xf32> to vector<1x256xf32>
    %6 = vector.broadcast %5 : vector<1x256xf32> to vector<8x256xf32>
    %7 = arith.mulf %3, %6 : vector<8x256xf32>
    %c16_i32 = arith.constant 16 : i32
    %8 = tpu.dynamic_rotate %2 by %c16_i32 dim 1 : vector<8x256xf32>, i32 -> vector<8x256xf32>
    %9 = vector.extract_strided_slice %0 {offsets = [1, 0, 0], sizes = [1, 1, 256], strides = [1, 1, 1]} : vector<9x1x256xf32> to vector<1x1x256xf32>
    %10 = vector.shape_cast %9 : vector<1x1x256xf32> to vector<1x256xf32>
    %11 = vector.broadcast %10 : vector<1x256xf32> to vector<8x256xf32>
    %12 = arith.mulf %8, %11 : vector<8x256xf32>
    %c15_i32 = arith.constant 15 : i32
    %13 = tpu.dynamic_rotate %2 by %c15_i32 dim 1 : vector<8x256xf32>, i32 -> vector<8x256xf32>
    %14 = vector.extract_strided_slice %0 {offsets = [2, 0, 0], sizes = [1, 1, 256], strides = [1, 1, 1]} : vector<9x1x256xf32> to vector<1x1x256xf32>
    %15 = vector.shape_cast %14 : vector<1x1x256xf32> to vector<1x256xf32>
    %16 = vector.broadcast %15 : vector<1x256xf32> to vector<8x256xf32>
    %17 = arith.mulf %13, %16 : vector<8x256xf32>
    %c1_i32 = arith.constant 1 : i32
    %18 = tpu.dynamic_rotate %2 by %c1_i32 dim 1 : vector<8x256xf32>, i32 -> vector<8x256xf32>
    %19 = vector.extract_strided_slice %0 {offsets = [3, 0, 0], sizes = [1, 1, 256], strides = [1, 1, 1]} : vector<9x1x256xf32> to vector<1x1x256xf32>
    %20 = vector.shape_cast %19 : vector<1x1x256xf32> to vector<1x256xf32>
    %21 = vector.broadcast %20 : vector<1x256xf32> to vector<8x256xf32>
    %22 = arith.mulf %18, %21 : vector<8x256xf32>
    %c255_i32 = arith.constant 255 : i32
    %23 = tpu.dynamic_rotate %2 by %c255_i32 dim 1 : vector<8x256xf32>, i32 -> vector<8x256xf32>
    %24 = vector.extract_strided_slice %0 {offsets = [5, 0, 0], sizes = [1, 1, 256], strides = [1, 1, 1]} : vector<9x1x256xf32> to vector<1x1x256xf32>
    %25 = vector.shape_cast %24 : vector<1x1x256xf32> to vector<1x256xf32>
    %26 = vector.broadcast %25 : vector<1x256xf32> to vector<8x256xf32>
    %27 = arith.mulf %23, %26 : vector<8x256xf32>
    %c241_i32 = arith.constant 241 : i32
    %28 = tpu.dynamic_rotate %2 by %c241_i32 dim 1 : vector<8x256xf32>, i32 -> vector<8x256xf32>
    %29 = vector.extract_strided_slice %0 {offsets = [6, 0, 0], sizes = [1, 1, 256], strides = [1, 1, 1]} : vector<9x1x256xf32> to vector<1x1x256xf32>
    %30 = vector.shape_cast %29 : vector<1x1x256xf32> to vector<1x256xf32>
    %31 = vector.broadcast %30 : vector<1x256xf32> to vector<8x256xf32>
    %32 = arith.mulf %28, %31 : vector<8x256xf32>
    %c240_i32 = arith.constant 240 : i32
    %33 = tpu.dynamic_rotate %2 by %c240_i32 dim 1 : vector<8x256xf32>, i32 -> vector<8x256xf32>
    %34 = vector.extract_strided_slice %0 {offsets = [7, 0, 0], sizes = [1, 1, 256], strides = [1, 1, 1]} : vector<9x1x256xf32> to vector<1x1x256xf32>
    %35 = vector.shape_cast %34 : vector<1x1x256xf32> to vector<1x256xf32>
    %36 = vector.broadcast %35 : vector<1x256xf32> to vector<8x256xf32>
    %37 = arith.mulf %33, %36 : vector<8x256xf32>
    %c239_i32 = arith.constant 239 : i32
    %38 = tpu.dynamic_rotate %2 by %c239_i32 dim 1 : vector<8x256xf32>, i32 -> vector<8x256xf32>
    %39 = vector.extract_strided_slice %0 {offsets = [8, 0, 0], sizes = [1, 1, 256], strides = [1, 1, 1]} : vector<9x1x256xf32> to vector<1x1x256xf32>
    %40 = vector.shape_cast %39 : vector<1x1x256xf32> to vector<1x256xf32>
    %41 = vector.broadcast %40 : vector<1x256xf32> to vector<8x256xf32>
    %42 = arith.mulf %38, %41 : vector<8x256xf32>
    %43 = tpu.concatenate %7, %12, %17, %22, %2, %27, %32, %37, %42 in 0 : vector<8x256xf32>, vector<8x256xf32>, vector<8x256xf32>, vector<8x256xf32>, vector<8x256xf32>, vector<8x256xf32>, vector<8x256xf32>, vector<8x256xf32>, vector<8x256xf32> -> vector<72x256xf32>
    %c0_5 = arith.constant 0 : index
    %c0_6 = arith.constant 0 : index
    %44 = vector.load %arg4[%c0_5, %c0_6] : memref<24x72xbf16, #tpu.memory_space<vmem>>, vector<24x72xbf16>
    %45 = arith.truncf %43 : vector<72x256xf32> to vector<72x256xbf16>
    %cst = arith.constant dense<0.000000e+00> : vector<24x256xf32>
    %46 = tpu.matmul %44, %45, %cst {dimension_numbers = #tpu.dot_dimension_numbers<[1], [0], [0], [1], [0, 0, 1, 1], [], []>} : vector<24x72xbf16>, vector<72x256xbf16>, vector<24x256xf32> -> vector<24x256xf32>
    %c0_7 = arith.constant 0 : index
    %c0_8 = arith.constant 0 : index
    %47 = vector.load %arg5[%c0_7, %c0_8] : memref<24x1xf32, #tpu.memory_space<vmem>>, vector<24x1xf32>
    %48 = vector.broadcast %47 : vector<24x1xf32> to vector<24x256xf32>
    %49 = arith.addf %46, %48 : vector<24x256xf32>
    %cst_9 = arith.constant 0.000000e+00 : f32
    %50 = vector.broadcast %cst_9 : f32 to vector<24x256xf32>
    %51 = arith.maximumf %49, %50 : vector<24x256xf32>
    %52 = vector.extract_strided_slice %49 {offsets = [16, 0], sizes = [8, 256], strides = [1, 1]} : vector<24x256xf32> to vector<8x256xf32>
    %53 = arith.negf %52 : vector<8x256xf32>
    %54 = math.exp %53 : vector<8x256xf32>
    %cst_10 = arith.constant 1.000000e+00 : f32
    %55 = vector.broadcast %cst_10 : f32 to vector<8x256xf32>
    %56 = arith.addf %55, %54 : vector<8x256xf32>
    %57 = arith.divf %55, %56 : vector<8x256xf32>
    %58 = vector.extract_strided_slice %51 {offsets = [0, 0], sizes = [8, 256], strides = [1, 1]} : vector<24x256xf32> to vector<8x256xf32>
    %c17_i32_11 = arith.constant 17 : i32
    %59 = tpu.dynamic_rotate %58 by %c17_i32_11 dim 1 : vector<8x256xf32>, i32 -> vector<8x256xf32>
    %60 = vector.extract_strided_slice %0 {offsets = [0, 0, 0], sizes = [1, 1, 256], strides = [1, 1, 1]} : vector<9x1x256xf32> to vector<1x1x256xf32>
    %61 = vector.shape_cast %60 : vector<1x1x256xf32> to vector<1x256xf32>
    %62 = vector.broadcast %61 : vector<1x256xf32> to vector<8x256xf32>
    %63 = arith.mulf %59, %62 : vector<8x256xf32>
    %c16_i32_12 = arith.constant 16 : i32
    %64 = tpu.dynamic_rotate %58 by %c16_i32_12 dim 1 : vector<8x256xf32>, i32 -> vector<8x256xf32>
    %65 = vector.extract_strided_slice %0 {offsets = [1, 0, 0], sizes = [1, 1, 256], strides = [1, 1, 1]} : vector<9x1x256xf32> to vector<1x1x256xf32>
    %66 = vector.shape_cast %65 : vector<1x1x256xf32> to vector<1x256xf32>
    %67 = vector.broadcast %66 : vector<1x256xf32> to vector<8x256xf32>
    %68 = arith.mulf %64, %67 : vector<8x256xf32>
    %c15_i32_13 = arith.constant 15 : i32
    %69 = tpu.dynamic_rotate %58 by %c15_i32_13 dim 1 : vector<8x256xf32>, i32 -> vector<8x256xf32>
    %70 = vector.extract_strided_slice %0 {offsets = [2, 0, 0], sizes = [1, 1, 256], strides = [1, 1, 1]} : vector<9x1x256xf32> to vector<1x1x256xf32>
    %71 = vector.shape_cast %70 : vector<1x1x256xf32> to vector<1x256xf32>
    %72 = vector.broadcast %71 : vector<1x256xf32> to vector<8x256xf32>
    %73 = arith.mulf %69, %72 : vector<8x256xf32>
    %c1_i32_14 = arith.constant 1 : i32
    %74 = tpu.dynamic_rotate %58 by %c1_i32_14 dim 1 : vector<8x256xf32>, i32 -> vector<8x256xf32>
    %75 = vector.extract_strided_slice %0 {offsets = [3, 0, 0], sizes = [1, 1, 256], strides = [1, 1, 1]} : vector<9x1x256xf32> to vector<1x1x256xf32>
    %76 = vector.shape_cast %75 : vector<1x1x256xf32> to vector<1x256xf32>
    %77 = vector.broadcast %76 : vector<1x256xf32> to vector<8x256xf32>
    %78 = arith.mulf %74, %77 : vector<8x256xf32>
    %c255_i32_15 = arith.constant 255 : i32
    %79 = tpu.dynamic_rotate %58 by %c255_i32_15 dim 1 : vector<8x256xf32>, i32 -> vector<8x256xf32>
    %80 = vector.extract_strided_slice %0 {offsets = [5, 0, 0], sizes = [1, 1, 256], strides = [1, 1, 1]} : vector<9x1x256xf32> to vector<1x1x256xf32>
    %81 = vector.shape_cast %80 : vector<1x1x256xf32> to vector<1x256xf32>
    %82 = vector.broadcast %81 : vector<1x256xf32> to vector<8x256xf32>
    %83 = arith.mulf %79, %82 : vector<8x256xf32>
    %c241_i32_16 = arith.constant 241 : i32
    %84 = tpu.dynamic_rotate %58 by %c241_i32_16 dim 1 : vector<8x256xf32>, i32 -> vector<8x256xf32>
    %85 = vector.extract_strided_slice %0 {offsets = [6, 0, 0], sizes = [1, 1, 256], strides = [1, 1, 1]} : vector<9x1x256xf32> to vector<1x1x256xf32>
    %86 = vector.shape_cast %85 : vector<1x1x256xf32> to vector<1x256xf32>
    %87 = vector.broadcast %86 : vector<1x256xf32> to vector<8x256xf32>
    %88 = arith.mulf %84, %87 : vector<8x256xf32>
    %c240_i32_17 = arith.constant 240 : i32
    %89 = tpu.dynamic_rotate %58 by %c240_i32_17 dim 1 : vector<8x256xf32>, i32 -> vector<8x256xf32>
    %90 = vector.extract_strided_slice %0 {offsets = [7, 0, 0], sizes = [1, 1, 256], strides = [1, 1, 1]} : vector<9x1x256xf32> to vector<1x1x256xf32>
    %91 = vector.shape_cast %90 : vector<1x1x256xf32> to vector<1x256xf32>
    %92 = vector.broadcast %91 : vector<1x256xf32> to vector<8x256xf32>
    %93 = arith.mulf %89, %92 : vector<8x256xf32>
    %c239_i32_18 = arith.constant 239 : i32
    %94 = tpu.dynamic_rotate %58 by %c239_i32_18 dim 1 : vector<8x256xf32>, i32 -> vector<8x256xf32>
    %95 = vector.extract_strided_slice %0 {offsets = [8, 0, 0], sizes = [1, 1, 256], strides = [1, 1, 1]} : vector<9x1x256xf32> to vector<1x1x256xf32>
    %96 = vector.shape_cast %95 : vector<1x1x256xf32> to vector<1x256xf32>
    %97 = vector.broadcast %96 : vector<1x256xf32> to vector<8x256xf32>
    %98 = arith.mulf %94, %97 : vector<8x256xf32>
    %99 = tpu.concatenate %63, %68, %73, %78, %58, %83, %88, %93, %98 in 0 : vector<8x256xf32>, vector<8x256xf32>, vector<8x256xf32>, vector<8x256xf32>, vector<8x256xf32>, vector<8x256xf32>, vector<8x256xf32>, vector<8x256xf32>, vector<8x256xf32> -> vector<72x256xf32>
    %c0_19 = arith.constant 0 : index
    %c0_20 = arith.constant 0 : index
    %100 = vector.load %arg6[%c0_19, %c0_20] : memref<16x72xbf16, #tpu.memory_space<vmem>>, vector<16x72xbf16>
    %101 = arith.truncf %99 : vector<72x256xf32> to vector<72x256xbf16>
    %cst_21 = arith.constant dense<0.000000e+00> : vector<16x256xf32>
    %102 = tpu.matmul %100, %101, %cst_21 {dimension_numbers = #tpu.dot_dimension_numbers<[1], [0], [0], [1], [0, 0, 1, 1], [], []>} : vector<16x72xbf16>, vector<72x256xbf16>, vector<16x256xf32> -> vector<16x256xf32>
    %c0_22 = arith.constant 0 : index
    %c0_23 = arith.constant 0 : index
    %103 = vector.load %arg7[%c0_22, %c0_23] : memref<16x1xf32, #tpu.memory_space<vmem>>, vector<16x1xf32>
    %104 = vector.broadcast %103 : vector<16x1xf32> to vector<16x256xf32>
    %105 = arith.addf %102, %104 : vector<16x256xf32>
    %cst_24 = arith.constant 0.000000e+00 : f32
    %106 = vector.broadcast %cst_24 : f32 to vector<16x256xf32>
    %107 = arith.maximumf %105, %106 : vector<16x256xf32>
    %c0_25 = arith.constant 0 : index
    %c0_26 = arith.constant 0 : index
    %108 = vector.load %arg3[%c0_25, %c0_26] : memref<48x256xf32, #tpu.memory_space<vmem>>, vector<48x256xf32>
    %109 = vector.extract_strided_slice %108 {offsets = [0, 0], sizes = [24, 256], strides = [1, 1]} : vector<48x256xf32> to vector<24x256xf32>
    %110 = arith.mulf %51, %109 : vector<24x256xf32>
    %111 = vector.shape_cast %110 : vector<24x256xf32> to vector<1x24x256xf32>
    %cst_27 = arith.constant dense<0.000000e+00> : vector<1xf32>
    %112 = vector.multi_reduction <add>, %111, %cst_27 [1, 2] : vector<1x24x256xf32> to vector<1xf32>
    %113 = vector.shape_cast %112 : vector<1xf32> to vector<1x1x1xf32>
    %114 = vector.extract %113[0, 0, 0] : f32 from vector<1x1x1xf32>
    %115 = vector.extract_strided_slice %108 {offsets = [24, 0], sizes = [8, 256], strides = [1, 1]} : vector<48x256xf32> to vector<8x256xf32>
    %116 = arith.mulf %57, %115 : vector<8x256xf32>
    %117 = vector.shape_cast %116 : vector<8x256xf32> to vector<1x8x256xf32>
    %cst_28 = arith.constant dense<0.000000e+00> : vector<1xf32>
    %118 = vector.multi_reduction <add>, %117, %cst_28 [1, 2] : vector<1x8x256xf32> to vector<1xf32>
    %119 = vector.shape_cast %118 : vector<1xf32> to vector<1x1x1xf32>
    %120 = vector.extract %119[0, 0, 0] : f32 from vector<1x1x1xf32>
    %121 = arith.addf %114, %120 : f32
    %122 = vector.extract_strided_slice %108 {offsets = [32, 0], sizes = [16, 256], strides = [1, 1]} : vector<48x256xf32> to vector<16x256xf32>
    %123 = arith.mulf %107, %122 : vector<16x256xf32>
    %124 = vector.shape_cast %123 : vector<16x256xf32> to vector<1x16x256xf32>
    %cst_29 = arith.constant dense<0.000000e+00> : vector<1xf32>
    %125 = vector.multi_reduction <add>, %124, %cst_29 [1, 2] : vector<1x16x256xf32> to vector<1xf32>
    %126 = vector.shape_cast %125 : vector<1xf32> to vector<1x1x1xf32>
    %127 = vector.extract %126[0, 0, 0] : f32 from vector<1x1x1xf32>
    %128 = arith.addf %121, %127 : f32
    %129 = vector.broadcast %128 : f32 to vector<1x1x1xf32>
    %c0_30 = arith.constant 0 : index
    %c0_31 = arith.constant 0 : index
    %c0_32 = arith.constant 0 : index
    %130 = vector.load %arg8[%c0_30, %c0_31, %c0_32] : memref<1x1x1xf32, #tpu.memory_space<vmem>>, vector<1x1x1xf32>
    tpu.vector_store %arg8[%c0_30, %c0_31, %c0_32], %129 {strides = array<i32>} : memref<1x1x1xf32, #tpu.memory_space<vmem>>, vector<1x1x1xf32>,
    return
  }
  func.func @transform_0(%arg0: i32) -> (i32, i32, i32) {
    %c0_i32 = arith.constant 0 : i32
    %c0_i32_0 = arith.constant 0 : i32
    %c0_i32_1 = arith.constant 0 : i32
    %c0_i32_2 = arith.constant 0 : i32
    return %c0_i32, %c0_i32_0, %c0_i32_1 : i32, i32, i32
  }
  func.func @transform_1(%arg0: i32) -> (i32, i32, i32) {
    %c0_i32 = arith.constant 0 : i32
    %c0_i32_0 = arith.constant 0 : i32
    %c0_i32_1 = arith.constant 0 : i32
    return %arg0, %c0_i32, %c0_i32_0 : i32, i32, i32
  }
  func.func @transform_2(%arg0: i32) -> (i32, i32) {
    %c0_i32 = arith.constant 0 : i32
    %c0_i32_0 = arith.constant 0 : i32
    %c0_i32_1 = arith.constant 0 : i32
    return %c0_i32, %c0_i32_0 : i32, i32
  }
  func.func @transform_3(%arg0: i32) -> (i32, i32) {
    %c0_i32 = arith.constant 0 : i32
    %c0_i32_0 = arith.constant 0 : i32
    %c0_i32_1 = arith.constant 0 : i32
    return %c0_i32, %c0_i32_0 : i32, i32
  }
  func.func @transform_4(%arg0: i32) -> (i32, i32) {
    %c0_i32 = arith.constant 0 : i32
    %c0_i32_0 = arith.constant 0 : i32
    %c0_i32_1 = arith.constant 0 : i32
    return %c0_i32, %c0_i32_0 : i32, i32
  }
  func.func @transform_5(%arg0: i32) -> (i32, i32) {
    %c0_i32 = arith.constant 0 : i32
    %c0_i32_0 = arith.constant 0 : i32
    %c0_i32_1 = arith.constant 0 : i32
    return %c0_i32, %c0_i32_0 : i32, i32
  }
  func.func @transform_6(%arg0: i32) -> (i32, i32) {
    %c0_i32 = arith.constant 0 : i32
    %c0_i32_0 = arith.constant 0 : i32
    %c0_i32_1 = arith.constant 0 : i32
    return %c0_i32, %c0_i32_0 : i32, i32
  }
  func.func @transform_7(%arg0: i32) -> (i32, i32, i32) {
    %c0_i32 = arith.constant 0 : i32
    %c0_i32_0 = arith.constant 0 : i32
    %c0_i32_1 = arith.constant 0 : i32
    return %arg0, %c0_i32, %c0_i32_0 : i32, i32, i32
  }
}

</mosaic_0001>

<bundles_post_ra>
// kernel: sample_net1_forward.1
= control target key start
LH: loop header
LB: loop body
LE: loop exit
PB: predicated region body
PF: predicated region fallthrough
CT: control target
= control target key end

     0   :  { %s944_s24 = smov 0   ;;  %s1309_s0 = inlined_call_operand.vmem [shape: f32[9,1,256], index: 0, kind: input, shape index: {}]   ;;  %s1310_s1 = inlined_call_operand.vmem [shape: f32[2,8,256], index: 1, kind: input, shape index: {}]   ;;  %s1311_s2 = inlined_call_operand.vmem [shape: f32[48,256], index: 2, kind: input, shape index: {}]   ;;  %s1312_s3 = inlined_call_operand.vmem [shape: bf16[24,72], index: 3, kind: input, shape index: {}]   ;;  %s1313_s4 = inlined_call_operand.vmem [shape: f32[24,1], index: 4, kind: input, shape index: {}]   ;;  %s1314_s5 = inlined_call_operand.vmem [shape: bf16[16,72], index: 5, kind: input, shape index: {}]   ;;  %s1315_s6 = inlined_call_operand.vmem [shape: f32[16,1], index: 6, kind: input, shape index: {}]   ;;  %s1316_s7 = inlined_call_operand.vmem [shape: f32[2,1,1], index: 7, kind: output, shape index: {}]  }
   0x1 LB: > { %s831_s25 = sadd.s32 4294967295, %s893_s24   ;;  %p835_p0 = scmp.ge.s32.totalorder %s893_s24, 1  ;;  %s893_s24 = sphi %s944_s24, %s17_s24  }
   0x2   : > { %p237_p1 = scmp.lt.s32.totalorder %s893_s24, 3 }
   0x4   : > { %p238_p2 = pnand %p835_p0, %p237_p1 }
   0x5   : > { %p267_p3 = scmp.lt.s32.totalorder (!%p238_p2), %s831_s25, 1  ;;  %s895_s30 = smov (!%p238_p2), 113  }
   0x6   : > { %241 = sbr.rel (%p238_p2) target bundleno = 931 (0x3a3), region = 48  ;;  %s896_s8 = smov (!%p238_p2), 111  }
   0x7   : > { %s897_s9 = smov (!%p238_p2), 112   ;;  %s898_s10 = smov (!%p238_p2), 127  }
   0x8   : > { %s899_s11 = smov (!%p238_p2), 15   ;;  %s900_s12 = smov (!%p238_p2), 1  }
   0x9   : > { %s902_s13 = smov (!%p238_p2), 17   ;;  %s903_s14 = smov (!%p238_p2), 16  }
   0xb   : > { %s1318_s25 = smov (!%p267_p3, %s831_s25), 1  ;;  %v901_v2 = vmov 0   ;;  %v461_v3 = vld [vmem:[%s1313_s4] sm:$0xff]  ;;  %v290_v4 = vlaneseq  ;;  %v283_v9 = vld [vmem:[%s1309_s0 + $0x10] sm:$0x3]  ;;  %vm494_vm3 = vcmask 1043456  }
   0xc   : > { %s850_s26 = sshll.u32 %s1318_s25, 4  ;;  %533 = vmatprep.mubr.bf16.mxu0 %v901_v2  ;;  %874 = vset.pattern.permute.xlu0 %v901_v2  ;;  %v281_v12 = vld [vmem:[%s1309_s0 + $0xc] sm:$0x3]  ;;  %v282_v14 = vld [vmem:[%s1309_s0 + $0xe] sm:$0x3]  ;;  %vm487_vm9 = vcmask 588800   ;;  %s274_s22 = scalar_lea.vmem %s1316_s7, %s1318_s25 }
   0xd   : > { %s271_s29 = scalar_lea.vmem %s1310_s1, %s850_s26  ;;  %875 = vset.pattern.permute.xlu1 %v901_v2  ;;  %704 = vmatprep.mubr.bf16.mxu1 %v901_v2  ;;  %v297_v5 = vshrl.u32 %v290_v4, 7  ;;  %v1001_v6 = vand.u32 127, %v290_v4  ;;  %v280_v23 = vld [vmem:[%s1309_s0 + $0xa] sm:$0x3]  ;;  %v278_v50 = vld [vmem:[%s1309_s0 + $0x4] sm:$0x3] }
   0xe   : > { %v958_v0 = vld [vmem:[%s271_s29] sm:$0xff]  ;;  %v964_v1 = vld [vmem:[%s271_s29 + $0x8] sm:$0xff]  ;;  %vm782_vm10 = vcmask 0  }
   0xf   : > { %388 = vrot.lane.b32.xlu1 %v958_v0, %s895_s30  ;;  %428 = vrot.lane.b32.xlu0 %v958_v0, %s896_s8  ;;  %v1003_v7 = vsub.s32 0, %v297_v5  ;;  %v1005_v8 = vsub.s32 1, %v297_v5  ;;  %vm432_vm0 = vcmp.lt.s32.totalorder %v1001_v6, 111  ;;  %vm392_vm1 = vcmp.lt.s32.totalorder %v1001_v6, 113  ;;  %v279_v51 = vld [vmem:[%s1309_s0 + $0x6] sm:$0x3] }
  0x10   : > { %vm412_vm2 = vcmp.lt.s32.totalorder %v1001_v6, 112  ;;  %vm372_vm4 = vcmp.lt.s32.totalorder %v1001_v6, 127  ;;  %vm332_vm5 = vcmp.lt.s32.totalorder %v1001_v6, 15  ;;  %vm352_vm6 = vcmp.lt.s32.totalorder %v1001_v6, 1 }
  0x11   : > { %v1015_v13 = vrot.slane %v283_v9, %v1003_v7  ;;  %v1021_v15 = vrot.slane %v283_v9, %v1005_v8  ;;  %v1025_v16 = vrot.slane %v281_v12, %v1003_v7  ;;  %v1029_v19 = vrot.slane %v281_v12, %v1005_v8 }
  0x12   : > { %v1036_v22 = vrot.slane %v282_v14, %v1003_v7  ;;  %v1045_v26 = vrot.slane %v282_v14, %v1005_v8  ;;  %v1052_v33 = vrot.slane %v280_v23, %v1003_v7  ;;  %v1060_v37 = vrot.slane %v280_v23, %v1005_v8 }
  0x13   : > { %390 = vrot.lane.b32.xlu1 %v964_v1, %s895_s30  ;;  %430 = vrot.lane.b32.xlu0 %v964_v1, %s896_s8  ;;  %v1083_v56 = vrot.slane %v278_v50, %v1003_v7  ;;  %v1086_v57 = vrot.slane %v278_v50, %v1005_v8  ;;  %v1090_v58 = vrot.slane %v279_v51, %v1003_v7  ;;  %vm292_vm7 = vcmp.lt.s32.totalorder %v1001_v6, 17 }
  0x14   : > { %v1093_v59 = vrot.slane %v279_v51, %v1005_v8  ;;  %vm312_vm8 = vcmp.lt.s32.totalorder %v1001_v6, 16  ;;  %v463_v51 = vld [vmem:[%s1313_s4 + $0x10] sm:$0xff]  ;;  %v878_v6 = vld [vmem:[%s1314_s5] sm:$0xff]  }
  0x17   : > { %410 = vrot.lane.b32.xlu1 %v964_v1, %s897_s9  ;;  %408 = vrot.lane.b32.xlu0 %v958_v0, %s897_s9 }
  0x1b   : > { %370 = vrot.lane.b32.xlu1 %v964_v1, %s898_s10  ;;  %368 = vrot.lane.b32.xlu0 %v958_v0, %s898_s10 }
  0x1f   : > { %330 = vrot.lane.b32.xlu1 %v964_v1, %s899_s11  ;;  %328 = vrot.lane.b32.xlu0 %v958_v0, %s899_s11 }
  0x23   : > { %350 = vrot.lane.b32.xlu1 %v964_v1, %s900_s12  ;;  %348 = vrot.lane.b32.xlu0 %v958_v0, %s900_s12 }
  0x27   : > { %288 = vrot.lane.b32.xlu1 %v964_v1, %s902_s13  ;;  %286 = vrot.lane.b32.xlu0 %v958_v0, %s902_s13 }
  0x2b   : > { %310 = vrot.lane.b32.xlu1 %v964_v1, %s903_s14  ;;  %308 = vrot.lane.b32.xlu0 %v958_v0, %s903_s14 }
  0x2f   : > { %466 = vperm.xlu0 %874, %v461_v3  }
  0x81   : > { %v389_v10 = vpop.permute.xlu1 %388  ;;  %v429_v11 = vpop.permute.xlu0 %428 }
  0x85   : > { %v391_v17 = vpop.permute.xlu1 %390  ;;  %v431_v18 = vpop.permute.xlu0 %430 }
  0x86   : > { %v433_v20 = vsel %vm432_vm0, %v429_v11, %v431_v18  ;;  %v434_v21 = vsel %vm432_vm0, %v431_v18, %v429_v11  ;;  %v393_v24 = vsel %vm392_vm1, %v389_v10, %v391_v17  ;;  %v394_v28 = vsel %vm392_vm1, %v391_v17, %v389_v10  ;;  %v276_v10 = vld [vmem:[%s1309_s0] sm:$0x3]  ;;  %v277_v11 = vld [vmem:[%s1309_s0 + $0x2] sm:$0x3] }
  0x87   : > { %v446_v25 = vmul.f32 %v1015_v13, %v433_v20  ;;  %v447_v27 = vmul.f32 %v1021_v15, %v434_v21  ;;  %v406_v34 = vmul.f32 %v1025_v16, %v393_v24  ;;  %v407_v38 = vmul.f32 %v1029_v19, %v394_v28 }
  0x88   : > { %v1115_v20 = vrot.slane %v276_v10, %v1003_v7  ;;  %v1118_v21 = vrot.slane %v276_v10, %v1005_v8  ;;  %v1122_v23 = vrot.slane %v277_v11, %v1003_v7  ;;  %v1125_v24 = vrot.slane %v277_v11, %v1005_v8 }
  0x89   : > { %v411_v29 = vpop.permute.xlu1 %410  ;;  %v409_v30 = vpop.permute.xlu0 %408  ;;  %v460_v31 = vpack.c.bf16 %v447_v27, %v447_v27  ;;  %v459_v32 = vpack.c.bf16 %v446_v25, %v446_v25 }
  0x8a   : > { %v413_v35 = vsel %vm412_vm2, %v409_v30, %v411_v29  ;;  %v414_v36 = vsel %vm412_vm2, %v411_v29, %v409_v30 }
  0x8b   : > { %v426_v39 = vmul.f32 %v1036_v22, %v413_v35  ;;  %v427_v40 = vmul.f32 %v1045_v26, %v414_v36  ;;  %840 = vmatprep.subr.msk.bf16.mxu0 %vm494_vm3, %v460_v31  ;;  %v496_v41 = vsel %vm494_vm3, %v459_v32, 0 }
  0x8c   : > { %508 = vmatpush1.bf16.msra.mxu0 %v496_v41 }
  0x8d   : > { %v371_v42 = vpop.permute.xlu1 %370  ;;  %v369_v43 = vpop.permute.xlu0 %368  ;;  %v458_v44 = vpack.c.bf16 %v427_v40, %v407_v38  ;;  %v457_v45 = vpack.c.bf16 %v426_v39, %v406_v34  ;;  %v876_v38 = vld [vmem:[%s1312_s3] sm:$0xff]   ;;  %v877_v39 = vld [vmem:[%s1312_s3 + $0x8] ss:$0 sps:$4 sm:$0xff]  }
  0x8e   : > { %v373_v46 = vsel %vm372_vm4, %v369_v43, %v371_v42  ;;  %v374_v47 = vsel %vm372_vm4, %v371_v42, %v369_v43 }
  0x8f   : > { %v386_v48 = vmul.f32 %v1052_v33, %v373_v46  ;;  %v387_v49 = vmul.f32 %v1060_v37, %v374_v47  ;;  %509 = vmatprep.subr.bf16.mxu0 %v458_v44 }
  0x90   : > { %510 = vmatpush1.bf16.msra.mxu0 %v457_v45 }
  0x91   : > { %v331_v52 = vpop.permute.xlu1 %330  ;;  %v329_v53 = vpop.permute.xlu0 %328  ;;  %v456_v54 = vpack.c.bf16 %v387_v49, %v964_v1  ;;  %v455_v55 = vpack.c.bf16 %v386_v48, %v958_v0 }
  0x92   : > { %v333_v60 = vsel %vm332_vm5, %v329_v53, %v331_v52  ;;  %v334_v61 = vsel %vm332_vm5, %v331_v52, %v329_v53  ;;  %v646_v53 = vld [vmem:[%s1315_s6] sm:$0xff] }
  0x93   : > { %511 = vmatprep.subr.bf16.mxu0 %v456_v54  ;;  %v346_v3 = vmul.f32 %v1083_v56, %v334_v61  ;;  %v347_v4 = vmul.f32 %v1086_v57, %v333_v60  ;;  %v462_v54 = vld [vmem:[%s1313_s4 + $0x8] sm:$0xff] }
  0x94   : > { %512 = vmatpush1.bf16.msra.mxu0 %v455_v55  ;;  %v647_v55 = vld [vmem:[%s1315_s6 + $0x8] sm:$0xff] }
  0x95   : > { %v351_v62 = vpop.permute.xlu1 %350  ;;  %v349_v63 = vpop.permute.xlu0 %348 }
  0x96   : > { %v353_v0 = vsel %vm352_vm6, %v349_v63, %v351_v62  ;;  %v354_v1 = vsel %vm352_vm6, %v351_v62, %v349_v63 }
  0x97   : > { %v366_v5 = vmul.f32 %v1090_v58, %v354_v1  ;;  %v367_v9 = vmul.f32 %v1093_v59, %v353_v0 }
  0x99   : > { %v289_v12 = vpop.permute.xlu1 %288  ;;  %v287_v14 = vpop.permute.xlu0 %286  ;;  %v454_v17 = vpack.c.bf16 %v367_v9, %v347_v4  ;;  %v453_v18 = vpack.c.bf16 %v366_v5, %v346_v3 }
  0x9a   : > { %v293_v25 = vsel %vm292_vm7, %v287_v14, %v289_v12  ;;  %v294_v27 = vsel %vm292_vm7, %v289_v12, %v287_v14 }
  0x9b   : > { %513 = vmatprep.subr.bf16.mxu0 %v454_v17  ;;  %v306_v7 = vmul.f32 %v1115_v20, %v294_v27  ;;  %v307_v8 = vmul.f32 %v1118_v21, %v293_v25 }
  0x9c   : > { %514 = vmatpush1.bf16.msra.mxu0 %v453_v18 }
  0x9d   : > { %v311_v28 = vpop.permute.xlu1 %310  ;;  %v309_v29 = vpop.permute.xlu0 %308 }
  0x9e   : > { %v313_v30 = vsel %vm312_vm8, %v309_v29, %v311_v28  ;;  %v314_v31 = vsel %vm312_vm8, %v311_v28, %v309_v29 }
  0x9f   : > { %v326_v32 = vmul.f32 %v1122_v23, %v314_v31  ;;  %v327_v34 = vmul.f32 %v1125_v24, %v313_v30 }
  0xa1   : > { %v452_v35 = vpack.c.bf16 %v327_v34, %v307_v8  ;;  %v451_v36 = vpack.c.bf16 %v326_v32, %v306_v7 }
  0xa3   : > { %515 = vmatprep.subr.bf16.mxu0 %v452_v35 }
  0xa4   : > { %516 = vmatpush1.bf16.msra.mxu0 %v451_v36 }
  0xa7   : > { %841 = vmatmul.mubr.msk.bf16.vlgmr.msra.gmra.mxu0 %vm487_vm9, %v876_v38 }
  0xa8   : > { %543 = vmatprep.mubr.bf16.mxu0 %v901_v2 }
  0xaa   : > { %v467_v40 = vpop.permute.xlu0 %466 }
  0xaf   : > { %842 = vmatmul.mubr.msk.bf16.gmra.mxu0 %vm487_vm9, %v877_v39 }
 0x167   : > { %v535_v41 = vpop.f32.mrf.mxu0 }
 0x168   : > { %v536_v42 = vadd.f32 %v535_v41, %v467_v40 }
 0x169   : > { %v537_v43 = vpop.f32.mrf.mxu0 }
 0x16a   : > { %v1148_v44 = vmax.f32 %v536_v42, 0.0  ;;  %v538_v45 = vadd.f32 %v537_v43, %v467_v40 }
 0x16b   : > { %v1168_v46 = vpop.f32.mrf.mxu0 }
 0x16c   : > { %610 = vrot.lane.b32.xlu0 %v1148_v44, %s895_s30  ;;  %626 = vrot.lane.b32.xlu1 %v1148_v44, %s896_s8  ;;  %v1154_v2 = vmax.f32 %v538_v45, 0.0 }
 0x16d   : > { %v1174_v47 = vpop.f32.mrf.mxu0 }
 0x16f   : > { %v1180_v48 = vpop.f32.mrf.mxu0 }
 0x170   : > { %618 = vrot.lane.b32.xlu0 %v1148_v44, %s897_s9  ;;  %628 = vrot.lane.b32.xlu1 %v1154_v2, %s896_s8 }
 0x171   : > { %v1182_v49 = vpop.f32.mrf.mxu0 }
 0x173   : > { %v549_v50 = vpop.f32.mrf.mxu0 }
 0x174   : > { %602 = vrot.lane.b32.xlu0 %v1148_v44, %s898_s10  ;;  %612 = vrot.lane.b32.xlu1 %v1154_v2, %s895_s30 }
 0x175   : > { %v550_v52 = vpop.f32.mrf.mxu0 }
 0x178   : > { %586 = vrot.lane.b32.xlu0 %v1148_v44, %s899_s11  ;;  %620 = vrot.lane.b32.xlu1 %v1154_v2, %s897_s9 }
 0x17c   : > { %594 = vrot.lane.b32.xlu0 %v1148_v44, %s900_s12  ;;  %604 = vrot.lane.b32.xlu1 %v1154_v2, %s898_s10 }
 0x180   : > { %570 = vrot.lane.b32.xlu0 %v1148_v44, %s902_s13  ;;  %588 = vrot.lane.b32.xlu1 %v1154_v2, %s899_s11 }
 0x184   : > { %578 = vrot.lane.b32.xlu0 %v1148_v44, %s903_s14  ;;  %596 = vrot.lane.b32.xlu1 %v1154_v2, %s900_s12 }
 0x188   : > { %476 = vperm.xlu0 %874, %v463_v51   ;;  %572 = vrot.lane.b32.xlu1 %v1154_v2, %s902_s13 }
 0x18c   : > { %650 = vperm.xlu0 %874, %v646_v53   ;;  %580 = vrot.lane.b32.xlu1 %v1154_v2, %s903_s14 }
 0x190   : > { %471 = vperm.xlu1 %875, %v462_v54  }
 0x194   : > { %655 = vperm.xlu1 %875, %v647_v55  }
 0x1de   : > { %v611_v60 = vpop.permute.xlu0 %610  ;;  %v627_v61 = vpop.permute.xlu1 %626 }
 0x1e2   : > { %v619_v62 = vpop.permute.xlu0 %618  ;;  %v629_v63 = vpop.permute.xlu1 %628 }
 0x1e3   : > { %v630_v0 = vsel %vm432_vm0, %v627_v61, %v629_v63  ;;  %v631_v1 = vsel %vm432_vm0, %v629_v63, %v627_v61 }
 0x1e4   : > { %v632_v3 = vmul.f32 %v630_v0, %v1015_v13  ;;  %v633_v4 = vmul.f32 %v631_v1, %v1021_v15 }
 0x1e6   : > { %v603_v5 = vpop.permute.xlu0 %602  ;;  %v613_v9 = vpop.permute.xlu1 %612  ;;  %v645_v10 = vpack.c.bf16 %v633_v4, %v633_v4  ;;  %v644_v11 = vpack.c.bf16 %v632_v3, %v632_v3 }
 0x1e7   : > { %v614_v14 = vsel %vm392_vm1, %v611_v60, %v613_v9  ;;  %v615_v17 = vsel %vm392_vm1, %v613_v9, %v611_v60 }
 0x1e8   : > { %846 = vmatprep.subr.msk.bf16.mxu1 %vm494_vm3, %v645_v10  ;;  %v667_v12 = vsel %vm494_vm3, %v644_v11, 0  ;;  %v616_v25 = vmul.f32 %v614_v14, %v1025_v16  ;;  %v617_v27 = vmul.f32 %v615_v17, %v1029_v19  ;;  %v721_v11 = vld [vmem:[%s1311_s2 + $0x10] sm:$0xff] }
 0x1e9   : > { %679 = vmatpush1.bf16.msra.mxu1 %v667_v12 }
 0x1ea   : > { %v621_v18 = vpop.permute.xlu1 %620  ;;  %v587_v28 = vpop.permute.xlu0 %586 }
 0x1eb   : > { %v622_v13 = vsel %vm412_vm2, %v619_v62, %v621_v18  ;;  %v623_v15 = vsel %vm412_vm2, %v621_v18, %v619_v62  ;;  %v722_v18 = vld [vmem:[%s1311_s2 + $0x18] sm:$0xff] }
 0x1ec   : > { %v624_v29 = vmul.f32 %v622_v13, %v1036_v22  ;;  %v625_v30 = vmul.f32 %v623_v15, %v1045_v26 }
 0x1ee   : > { %v605_v31 = vpop.permute.xlu1 %604  ;;  %v643_v7 = vpack.c.bf16 %v625_v30, %v617_v27  ;;  %v642_v8 = vpack.c.bf16 %v624_v29, %v616_v25  ;;  %v595_v19 = vpop.permute.xlu0 %594 }
 0x1ef   : > { %v606_v32 = vsel %vm372_vm4, %v603_v5, %v605_v31  ;;  %v607_v34 = vsel %vm372_vm4, %v605_v31, %v603_v5 }
 0x1f0   : > { %v608_v35 = vmul.f32 %v606_v32, %v1052_v33  ;;  %v609_v16 = vmul.f32 %v607_v34, %v1060_v37  ;;  %680 = vmatprep.subr.bf16.mxu1 %v643_v7 }
 0x1f1   : > { %681 = vmatpush1.bf16.msra.mxu1 %v642_v8 }
 0x1f2   : > { %v589_v36 = vpop.permute.xlu1 %588  ;;  %v641_v22 = vpack.c.bf16 %v609_v16, %v1154_v2  ;;  %v640_v26 = vpack.c.bf16 %v608_v35, %v1148_v44  ;;  %v571_v41 = vpop.permute.xlu0 %570  ;;  %v725_v16 = vld [vmem:[%s1311_s2 + $0x30] sm:$0xff] }
 0x1f3   : > { %v590_v38 = vsel %vm332_vm5, %v587_v28, %v589_v36  ;;  %v591_v39 = vsel %vm332_vm5, %v589_v36, %v587_v28  ;;  %v724_v28 = vld [vmem:[%s1311_s2 + $0x28] sm:$0xff] }
 0x1f4   : > { %682 = vmatprep.subr.bf16.mxu1 %v641_v22  ;;  %v592_v42 = vmul.f32 %v591_v39, %v1083_v56  ;;  %v593_v43 = vmul.f32 %v590_v38, %v1086_v57 }
 0x1f5   : > { %683 = vmatpush1.bf16.msra.mxu1 %v640_v26 }
 0x1f6   : > { %v597_v40 = vpop.permute.xlu1 %596  ;;  %v579_v60 = vpop.permute.xlu0 %578 }
 0x1f7   : > { %v598_v33 = vsel %vm352_vm6, %v595_v19, %v597_v40  ;;  %v599_v37 = vsel %vm352_vm6, %v597_v40, %v595_v19  ;;  %v726_v19 = vld [vmem:[%s1311_s2 + $0x38] sm:$0xff] }
 0x1f8   : > { %v600_v45 = vmul.f32 %v599_v37, %v1090_v58  ;;  %v601_v50 = vmul.f32 %v598_v33, %v1093_v59 }
 0x1fa   : > { %v573_v51 = vpop.permute.xlu1 %572  ;;  %v639_v52 = vpack.c.bf16 %v601_v50, %v593_v43  ;;  %v638_v53 = vpack.c.bf16 %v600_v45, %v592_v42 }
 0x1fb   : > { %v574_v54 = vsel %vm292_vm7, %v571_v41, %v573_v51  ;;  %v575_v55 = vsel %vm292_vm7, %v573_v51, %v571_v41 }
 0x1fc   : > { %684 = vmatprep.subr.bf16.mxu1 %v639_v52  ;;  %v576_v58 = vmul.f32 %v575_v55, %v1115_v20  ;;  %v577_v59 = vmul.f32 %v574_v54, %v1118_v21  ;;  %v720_v21 = vld [vmem:[%s1311_s2 + $0x8] sm:$0xff] }
 0x1fd   : > { %685 = vmatpush1.bf16.msra.mxu1 %v638_v53 }
 0x1fe   : > { %v581_v61 = vpop.permute.xlu1 %580 }
 0x1ff   : > { %v582_v56 = vsel %vm312_vm8, %v579_v60, %v581_v61  ;;  %v583_v57 = vsel %vm312_vm8, %v581_v61, %v579_v60 }
 0x200   : > { %v584_v62 = vmul.f32 %v583_v57, %v1122_v23  ;;  %v585_v63 = vmul.f32 %v582_v56, %v1125_v24  ;;  %v719_v23 = vld [vmem:[%s1311_s2] sm:$0xff] }
 0x201   : > { %v731_v17 = vmul.f32 %v719_v23, %v1148_v44 }
 0x202   : > { %v637_v0 = vpack.c.bf16 %v585_v63, %v577_v59  ;;  %v636_v1 = vpack.c.bf16 %v584_v62, %v576_v58 }
 0x203   : > { %v477_v3 = vpop.permute.xlu0 %476 }
 0x204   : > { %v546_v4 = vadd.f32 %v1180_v48, %v477_v3  ;;  %v548_v5 = vadd.f32 %v1182_v49, %v477_v3  ;;  %686 = vmatprep.subr.bf16.mxu1 %v637_v0  ;;  %v732_v48 = vmul.f32 %v720_v21, %v1154_v2  ;;  %v723_v2 = vld [vmem:[%s1311_s2 + $0x20] sm:$0xff] }
 0x205   : > { %687 = vmatpush1.bf16.msra.mxu1 %v636_v1  ;;  %v727_v0 = vld [vmem:[%s1311_s2 + $0x40] sm:$0xff]  ;;  %v728_v1 = vld [vmem:[%s1311_s2 + $0x48] sm:$0xff] }
 0x206   : > { %v843_v20 = vmul.f32 -1.442695, %v546_v4  ;;  %v844_v9 = vmul.f32 -1.442695, %v548_v5  ;;  %v556_v13 = vmax.f32 %v546_v4, 0.0  ;;  %v737_v25 = vadd.f32 %v732_v48, %v731_v17  ;;  %v730_v48 = vld [vmem:[%s1311_s2 + $0x58] sm:$0xff] }
 0x207   : > { %v651_v40 = vpop.permute.xlu0 %650 }
 0x208   : > { %879 = vpow2.f32 %v843_v20  ;;  %847 = vmatmul.mubr.msk.bf16.vlgmr.msra.gmra.mxu1 %vm487_vm9, %v878_v6  ;;  %v735_v29 = vmul.f32 %v723_v2, %v556_v13  ;;  %v729_v6 = vld [vmem:[%s1311_s2 + $0x50] sm:$0xff] }
 0x209   : > { %881 = vpow2.f32 %v844_v9 }
 0x20b   : > { %v472_v24 = vpop.permute.xlu1 %471 }
 0x20c   : > { %v540_v49 = vadd.f32 %v1168_v46, %v472_v24  ;;  %v542_v10 = vadd.f32 %v1174_v47, %v472_v24  ;;  %v557_v46 = vmax.f32 %v548_v5, 0.0 }
 0x20e   : > { %v554_v12 = vmax.f32 %v540_v49, 0.0  ;;  %v555_v14 = vmax.f32 %v542_v10, 0.0  ;;  %v736_v8 = vmul.f32 %v724_v28, %v557_v46 }
 0x20f   : > { %v656_v50 = vpop.permute.xlu1 %655 }
 0x210   : > { %v733_v15 = vmul.f32 %v721_v11, %v554_v12  ;;  %v734_v47 = vmul.f32 %v722_v18, %v555_v14 }
 0x212   : > { %v738_v27 = vadd.f32 %v737_v25, %v733_v15 }
 0x214   : > { %v739_v44 = vadd.f32 %v738_v27, %v734_v47 }
 0x215   : > { %v880_v30 = vpop.eup %879 }
 0x216   : > { %v882_v31 = vpop.eup %881  ;;  %v564_v7 = vadd.f32 1.0, %v880_v30  ;;  %v740_v32 = vadd.f32 %v739_v44, %v735_v29 }
 0x217   : > { %v565_v34 = vadd.f32 1.0, %v882_v31 }
 0x218   : > { %883 = vrcp.f32 %v564_v7  ;;  %v741_v35 = vadd.f32 %v740_v32, %v736_v8 }
 0x219   : > { %885 = vrcp.f32 %v565_v34 }
 0x21a   : > { %742 = vadd.xlane.f32.xlu0 %v741_v35 }
 0x225   : > { %v884_v36 = vpop.eup %883 }
 0x226   : > { %v886_v22 = vpop.eup %885  ;;  %v751_v26 = vmul.f32 %v884_v36, %v725_v16 }
 0x227   : > { %v752_v38 = vmul.f32 %v886_v22, %v726_v19 }
 0x229   : > { %v753_v39 = vadd.f32 %v752_v38, %v751_v26 }
 0x22b   : > { %754 = vadd.xlane.f32.xlu1 %v753_v39 }
 0x2a3   : > { %v743_v33 = vpop.xlane.xlu0 %742 }
 0x2a4   : > { %v744_v37 = vrot.slane %v743_v33, 4 }
 0x2a6   : > { %v745_v41 = vadd.f32 %v744_v37, %v743_v33 }
 0x2a8   : > { %v746_v42 = vrot.slane %v745_v41, 2 }
 0x2aa   : > { %v747_v43 = vadd.f32 %v746_v42, %v745_v41 }
 0x2ac   : > { %v748_v45 = vrot.slane %v747_v43, 1 }
 0x2ae   : > { %v749_v51 = vadd.f32 %v748_v45, %v747_v43 }
 0x2b0   : > { %851 = vpush %v749_v51 }
 0x2b4   : > { %v755_v52 = vpop.xlane.xlu1 %754 }
 0x2b5   : > { %v756_v53 = vrot.slane %v755_v52, 4 }
 0x2b7   : > { %v757_v54 = vadd.f32 %v756_v53, %v755_v52 }
 0x2b9   : > { %v758_v55 = vrot.slane %v757_v54, 2 }
 0x2bb   : > { %v759_v60 = vadd.f32 %v758_v55, %v757_v54 }
 0x2bd   : > { %v760_v61 = vrot.slane %v759_v60, 1 }
 0x2bf   : > { %v761_v56 = vadd.f32 %v760_v61, %v759_v60 }
 0x2c1   : > { %853 = vpush %v761_v56 }
 0x2c8   : > { %v706_v57 = vpop.f32.mrf.mxu1 }
 0x2c9   : > { %v707_v58 = vadd.f32 %v706_v57, %v651_v40 }
 0x2ca   : > { %v708_v59 = vpop.f32.mrf.mxu1 }
 0x2cb   : > { %v715_v62 = vmax.f32 %v707_v58, 0.0  ;;  %v709_v63 = vadd.f32 %v708_v59, %v651_v40 }
 0x2cc   : > { %v710_v3 = vpop.f32.mrf.mxu1 }
 0x2cd   : > { %v716_v4 = vmax.f32 %v709_v63, 0.0  ;;  %v711_v5 = vadd.f32 %v710_v3, %v656_v50  ;;  %v764_v9 = vmul.f32 %v727_v0, %v715_v62 }
 0x2ce   : > { %v712_v20 = vpop.f32.mrf.mxu1 }
 0x2cf   : > { %v765_v21 = vmul.f32 %v728_v1, %v716_v4  ;;  %v717_v23 = vmax.f32 %v711_v5, 0.0  ;;  %v713_v24 = vadd.f32 %v712_v20, %v656_v50 }
 0x2d1   : > { %v768_v49 = vadd.f32 %v765_v21, %v764_v9  ;;  %v766_v10 = vmul.f32 %v729_v6, %v717_v23  ;;  %v718_v11 = vmax.f32 %v713_v24, 0.0 }
 0x2d3   : > { %v767_v12 = vmul.f32 %v730_v48, %v718_v11  ;;  %v769_v14 = vadd.f32 %v768_v49, %v766_v10 }
 0x2d5   : > { %v770_v17 = vadd.f32 %v769_v14, %v767_v12 }
 0x2d7   : > { %771 = vadd.xlane.f32.xlu0 %v770_v17 }
 0x2e1   : > { %s852_s16 = spop %851 }
 0x2f2   : > { %s854_s17 = spop %853 }
 0x2f3   : > { %s763_s18 = sadd.f32 %s854_s17, %s852_s16 }
 0x360   : > { %v772_v18 = vpop.xlane.xlu0 %771 }
 0x361   : > { %v773_v13 = vrot.slane %v772_v18, 4 }
 0x363   : > { %v774_v15 = vadd.f32 %v773_v13, %v772_v18 }
 0x365   : > { %v775_v25 = vrot.slane %v774_v15, 2 }
 0x367   : > { %v776_v2 = vadd.f32 %v775_v25, %v774_v15 }
 0x369   : > { %v777_v46 = vrot.slane %v776_v2, 1 }
 0x36b   : > { %v778_v47 = vadd.f32 %v777_v46, %v776_v2 }
 0x36d   : > { %855 = vpush %v778_v47 }
 0x39e   : > { %s856_s19 = spop %855 }
 0x39f   : > { %s780_s23 = sadd.f32 %s856_s19, %s763_s18 }
 0x3a1   : > { %v781_v27 = vstv %s780_s23 }
 0x3a2   : > { %783 = vst.msk [vmem:[%s274_s22] sm:$0x1] %vm782_vm10, %v781_v27 }
 0x3a3 PF: > { %s17_s24 = sadd.s32 1, %s893_s24  }
 0x3a4   : > { %p14_p4 = scmp.ge.s32.totalorder %s17_s24, 4  }
 0x3a6   :  { %16 = sbr.rel (!%p14_p4) target bundleno = 1 (0x1), region = 78 }

</bundles_post_ra>
